<compile_context>
chip_gen: v6e
topology: v6e:2x2x1
jax: 0.10.0
libtpu: 0.0.40
codegen_flags: <defaults>
</compile_context>

<pallas_src>
import jax
import jax.numpy as jnp
from jax.experimental import pallas as pl
from jax.experimental.pallas import tpu as pltpu

LANE = 1024        # lane width: large multiple of 128 -> unmasked vst
TILE_ROWS = 512    # 512 x 1024 f32 = 2 MiB per buffer


def _prelu_kernel(w_ref, x_ref, o_ref):
    # w_ref: (1, 1) scalar PReLU weight in SMEM
    # x_ref / o_ref: (tile_rows, LANE) tile in VMEM
    w = w_ref[0, 0]
    x = x_ref[...]
    o_ref[...] = jnp.where(x >= 0, x, x * w).astype(o_ref.dtype)


@jax.jit
def observed_prelu(x, weight):
    """x: (N, C, H, W) float32, weight: shape-(1,) float32 (nn.PReLU default)."""
    orig_shape = x.shape
    total = x.size                      # static under jit
    flat = x.reshape(-1)

    # Lane-dense slab: pad flat length up to padded_rows * LANE.
    rows = pl.cdiv(total, LANE)
    if rows <= TILE_ROWS:
        tile_rows = rows                # single full-extent row block
        padded_rows = rows
    else:
        tile_rows = TILE_ROWS
        padded_rows = pl.cdiv(rows, TILE_ROWS) * TILE_ROWS

    padded_total = padded_rows * LANE
    if padded_total != total:
        flat = jnp.pad(flat, (0, padded_total - total))
    x2d = flat.reshape(padded_rows, LANE)
    w2d = weight.reshape(1, 1).astype(x.dtype)

    grid = (padded_rows // tile_rows,)

    out2d = pl.pallas_call(
        _prelu_kernel,
        out_shape=jax.ShapeDtypeStruct((padded_rows, LANE), x.dtype),
        grid_spec=pltpu.PrefetchScalarGridSpec(
            num_scalar_prefetch=0,
            grid=grid,
            in_specs=[
                pl.BlockSpec(memory_space=pltpu.SMEM),               # scalar w
                pl.BlockSpec((tile_rows, LANE), lambda i: (i, 0)),   # x tile
            ],
            out_specs=pl.BlockSpec((tile_rows, LANE), lambda i: (i, 0)),
        ),
        compiler_params=pltpu.CompilerParams(
            dimension_semantics=("parallel",),
            vmem_limit_bytes=32 * 1024 * 1024,   # safe on v5e/v6e/v7x
        ),
    )(w2d, x2d)

    out_flat = out2d.reshape(-1)
    if padded_total != total:
        out_flat = out_flat[:total]
    return out_flat.reshape(orig_shape)


if __name__ == "__main__":
    key = jax.random.PRNGKey(0)
    kx, kx2 = jax.random.split(key)

    # Deterministic PReLU weight (PyTorch default init for nn.PReLU is 0.25).
    weight = jnp.array([0.25], dtype=jnp.float32)

    # Small NCHW input consistent with a conv-style activation map.
    x = jax.random.normal(kx, (2, 4, 16, 16), dtype=jnp.float32)
    y = jax.block_until_ready(observed_prelu(x, weight))
    y_ref = jnp.maximum(x, 0.0) + (-weight[0]) * jnp.maximum(-x, 0.0)
    assert jnp.allclose(y, y_ref, atol=1e-6), "mismatch vs reference (aligned)"

    # Non-lane-aligned feature map (7x7) to exercise the padded-tail path.
    x2 = jax.random.normal(kx2, (2, 3, 7, 7), dtype=jnp.float32)
    y2 = jax.block_until_ready(observed_prelu(x2, weight))
    y2_ref = jnp.maximum(x2, 0.0) + (-weight[0]) * jnp.maximum(-x2, 0.0)
    assert jnp.allclose(y2, y2_ref, atol=1e-6), "mismatch vs reference (padded tail)"

    print("KERNEL_OK")
</pallas_src>

<mosaic_0001>
module attributes {stable_mosaic.version = 11 : i64} {
  func.func @_prelu_kernel(%arg0: i32, %arg1: memref<1x1xf32, #tpu.memory_space<smem>>, %arg2: memref<2x1024xf32, #tpu.memory_space<vmem>>, %arg3: memref<2x1024xf32, #tpu.memory_space<vmem>>) attributes {dimension_semantics = [#tpu.dimension_semantics<parallel>], iteration_bounds = array<i64: 1>, scalar_prefetch = 0 : i64, scratch_operands = 0 : i64, tpu.core_type = #tpu.core_type<tc>, window_params = [{transform_indices = @transform_0, window_bounds = array<i64: 1, 1>}, {transform_indices = @transform_1, window_bounds = array<i64: 2, 1024>}, {transform_indices = @transform_2, window_bounds = array<i64: 2, 1024>}]} {
    %c0 = arith.constant 0 : index
    %c0_0 = arith.constant 0 : index
    %0 = memref.load %arg1[%c0, %c0_0] : memref<1x1xf32, #tpu.memory_space<smem>>
    %c0_1 = arith.constant 0 : index
    %c0_2 = arith.constant 0 : index
    %1 = vector.load %arg2[%c0_1, %c0_2] : memref<2x1024xf32, #tpu.memory_space<vmem>>, vector<2x1024xf32>
    %cst = arith.constant 0.000000e+00 : f32
    %2 = vector.broadcast %cst : f32 to vector<2x1024xf32>
    %3 = arith.cmpf oge, %1, %2 : vector<2x1024xf32>
    %4 = vector.broadcast %0 : f32 to vector<2x1024xf32>
    %5 = arith.mulf %1, %4 : vector<2x1024xf32>
    %6 = arith.select %3, %1, %5 : vector<2x1024xi1>, vector<2x1024xf32>
    %c0_3 = arith.constant 0 : index
    %c0_4 = arith.constant 0 : index
    %7 = vector.load %arg3[%c0_3, %c0_4] : memref<2x1024xf32, #tpu.memory_space<vmem>>, vector<2x1024xf32>
    tpu.vector_store %arg3[%c0_3, %c0_4], %6 {strides = array<i32>} : memref<2x1024xf32, #tpu.memory_space<vmem>>, vector<2x1024xf32>,
    return
  }
  func.func @transform_0(%arg0: i32) -> (i32, i32) {
    %c0_i32 = arith.constant 0 : i32
    %c0_i32_0 = arith.constant 0 : i32
    %c0_i32_1 = arith.constant 0 : i32
    return %c0_i32, %c0_i32_0 : i32, i32
  }
  func.func @transform_1(%arg0: i32) -> (i32, i32) {
    %c0_i32 = arith.constant 0 : i32
    %c0_i32_0 = arith.constant 0 : i32
    return %arg0, %c0_i32 : i32, i32
  }
  func.func @transform_2(%arg0: i32) -> (i32, i32) {
    %c0_i32 = arith.constant 0 : i32
    %c0_i32_0 = arith.constant 0 : i32
    return %arg0, %c0_i32 : i32, i32
  }
}

</mosaic_0001>

<bundles_post_ra>
// kernel: observed_prelu.1
= control target key start
LH: loop header
LB: loop body
LE: loop exit
PB: predicated region body
PF: predicated region fallthrough
CT: control target
= control target key end

     0   :  { %s58_s0 = inlined_call_operand.<no memory space> [shape: f32[1,1], index: 0, kind: input, shape index: {}]   ;;  %s59_s1 = inlined_call_operand.vmem [shape: f32[2,1024], index: 1, kind: input, shape index: {}]   ;;  %s60_s2 = inlined_call_operand.vmem [shape: f32[2,1024], index: 2, kind: output, shape index: {}]  }
   0x1   :  { %v13_v0 = vld [vmem:[%s59_s1] sm:$0xff]  ;;  %v17_v1 = vstv %s58_s0  ;;  %v14_v2 = vld [vmem:[%s59_s1 + $0x8] sm:$0xff] }
   0x2   :  { %vm15_vm0 = vcmp.ge.f32.partialorder %v13_v0, 0.0  ;;  %v18_v3 = vmul.f32 %v17_v1, %v13_v0  ;;  %vm16_vm1 = vcmp.ge.f32.partialorder %v14_v2, 0.0  ;;  %v19_v4 = vmul.f32 %v17_v1, %v14_v2 }
   0x4   :  { %v20_v5 = vsel %vm15_vm0, %v13_v0, %v18_v3  ;;  %v21_v6 = vsel %vm16_vm1, %v14_v2, %v19_v4 }
   0x5   :  { %22 = vst [vmem:[%s60_s2] sm:$0xff] %v20_v5  ;;  %23 = vst [vmem:[%s60_s2 + $0x8] sm:$0xff] %v21_v6 }

</bundles_post_ra>
